<compile_context>
chip_gen: v7x
topology: tpu7x:2x2x1
jax: 0.10.0
libtpu: 0.0.40
codegen_flags: <defaults>
</compile_context>

<pallas_src>
import functools

import jax
import jax.numpy as jnp
from jax.experimental import pallas as pl
from jax.experimental.pallas import tpu as pltpu


def _mse_trig_kernel(pred_ref, tgt_ref, out_ref, acc_ref, *,
                     tm, n_rows, tiles_per_core, needs_mask,
                     first_masked_tile):
    c = pl.program_id(0)          # core-parallel axis
    t = pl.program_id(1)          # sequential reduction axis

    @pl.when(t == 0)
    def _init():
        acc_ref[0] = jnp.float32(0.0)
        acc_ref[1] = jnp.float32(0.0)

    pred = pred_ref[...].astype(jnp.float32)          # (tm, d)
    tgt = tgt_ref[...].astype(jnp.float32)            # (tm, d)
    d = pred.shape[1]

    diff = pred - tgt                                  # (tm, d)

    # Trig constraint from the last two feature columns only (static slices,
    # no full-tile masking / iota work).
    cos_v = pred[:, d - 2:d - 1]                       # (tm, 1)
    sin_v = pred[:, d - 1:d]                           # (tm, 1)
    abs_err = jnp.abs(1.0 - jnp.sqrt(cos_v * cos_v + sin_v * sin_v))  # (tm, 1)

    if needs_mask:
        gtile = c * tiles_per_core + t                 # global tile index

        def _masked():
            # Only tiles whose rows extend past n_rows pay for the mask
            # (includes any phantom tiles created by the dual-core split).
            row_ids = jax.lax.broadcasted_iota(jnp.int32, (tm, 1), 0) + gtile * tm
            row_mask = row_ids < n_rows                # (tm, 1) bool
            dm = jnp.where(row_mask, diff, 0.0)
            acc_ref[0] = acc_ref[0] + jnp.sum(dm * dm)
            acc_ref[1] = acc_ref[1] + jnp.sum(jnp.where(row_mask, abs_err, 0.0))

        def _plain():
            acc_ref[0] = acc_ref[0] + jnp.sum(diff * diff)
            acc_ref[1] = acc_ref[1] + jnp.sum(abs_err)

        is_masked = gtile >= first_masked_tile
        pl.when(is_masked)(_masked)
        pl.when(jnp.logical_not(is_masked))(_plain)
    else:
        acc_ref[0] = acc_ref[0] + jnp.sum(diff * diff)
        acc_ref[1] = acc_ref[1] + jnp.sum(abs_err)

    @pl.when(t == pl.num_programs(1) - 1)
    def _finalize():
        # Per-core partials: row 0 = sum of squared error, row 1 = sum of
        # |1 - norm|; broadcast across lanes, wrapper reads lane 0.
        row_sq = jnp.full((1, 1, 128), acc_ref[0], dtype=jnp.float32)
        row_ab = jnp.full((1, 1, 128), acc_ref[1], dtype=jnp.float32)
        out_ref[...] = jnp.concatenate([row_sq, row_ab], axis=1)


def mse_with_trig_constraint(prediction, target, trig_lagrangian: float = 1.0,
                             tm: int | None = None):
    """Pallas wrapper. prediction/target: (N, D) float32. Returns scalar f32."""
    assert prediction.shape == target.shape
    assert prediction.ndim == 2 and prediction.shape[1] >= 2
    n, d = prediction.shape

    if tm is None:
        # ~32 MiB of input double-buffers (2 inputs x 2 pipeline bufs x tile),
        # sized against the lane-padded feature width; explicit
        # vmem_limit_bytes below keeps this legal on every generation.
        d_lanes = max(128, ((d + 127) // 128) * 128)
        budget_bytes = 32 * 1024 * 1024
        tm = budget_bytes // (2 * 2 * d_lanes * 4)
    if tm >= n:
        tm = n                           # single full-extent block (always legal)
    else:
        tm = max(8, (tm // 8) * 8)       # sublane rule for partial blocks

    tiles_total = pl.cdiv(n, tm)
    n_cores = 2 if tiles_total >= 2 else 1        # core-parallel split (v7x)
    tiles_per_core = pl.cdiv(tiles_total, n_cores)
    covered_rows = n_cores * tiles_per_core * tm
    needs_mask = covered_rows != n                 # any padded / phantom rows?
    first_masked_tile = n // tm                    # first tile containing padding

    def in_index(c_idx, t_idx):
        # Clamp so phantom tiles (from the core split) never DMA out of bounds;
        # their contributions are zeroed by the in-kernel row mask.
        return (jnp.minimum(c_idx * tiles_per_core + t_idx, tiles_total - 1), 0)

    kernel = functools.partial(
        _mse_trig_kernel,
        tm=tm, n_rows=n, tiles_per_core=tiles_per_core,
        needs_mask=needs_mask, first_masked_tile=first_masked_tile)

    partials = pl.pallas_call(
        kernel,
        out_shape=jax.ShapeDtypeStruct((n_cores, 2, 128), jnp.float32),
        grid=(n_cores, tiles_per_core),
        in_specs=[
            pl.BlockSpec((tm, d), in_index),
            pl.BlockSpec((tm, d), in_index),
        ],
        # One (1, 2, 128) partial-sum block per core; resident across the
        # reduction axis, written once in the final step.
        out_specs=pl.BlockSpec((1, 2, 128), lambda c_idx, t_idx: (c_idx, 0, 0)),
        # Running (sum_sq, sum_abs) partials on the scalar path, per core.
        scratch_shapes=[pltpu.SMEM((2,), jnp.float32)],
        compiler_params=pltpu.CompilerParams(
            dimension_semantics=("parallel", "arbitrary"),
            vmem_limit_bytes=48 * 1024 * 1024),
        cost_estimate=pl.CostEstimate(
            flops=3 * n * d + 5 * n,
            transcendentals=n,
            bytes_accessed=2 * n * d * 4 + n_cores * 2 * 128 * 4),
    )(prediction, target)

    sq_sum = jnp.sum(partials[:, 0, 0])
    abs_sum = jnp.sum(partials[:, 1, 0])
    mse_scale = jnp.float32(1.0 / float(n * d))
    trig_scale = jnp.float32(float(trig_lagrangian) / float(n))
    return sq_sum * mse_scale + abs_sum * trig_scale


def _reference(prediction, target, trig_lagrangian: float = 1.0):
    mse = jnp.mean((prediction - target) ** 2)
    cos_v = prediction[:, -2]
    sin_v = prediction[:, -1]
    norm = jnp.sqrt(cos_v ** 2 + sin_v ** 2)
    return mse + trig_lagrangian * jnp.mean(jnp.abs(1.0 - norm))


if __name__ == "__main__":
    key = jax.random.PRNGKey(0)
    k1, k2, k3, k4, k5, k6 = jax.random.split(key, 6)

    # Case 1: module-like small shape (batch=8, features=32; last two = cos, sin).
    pred1 = jax.random.normal(k1, (8, 32), dtype=jnp.float32)
    tgt1 = jax.random.normal(k2, (8, 32), dtype=jnp.float32)
    out1 = jax.block_until_ready(mse_with_trig_constraint(pred1, tgt1, 1.0))
    ref1 = jax.block_until_ready(_reference(pred1, tgt1, 1.0))
    assert jnp.allclose(out1, ref1, rtol=1e-4, atol=1e-5), (out1, ref1)

    # Case 2: tiled + dual-core + ragged last tile (N=100, D=160, tm=32 ->
    # 4 tiles split 2 per core, last tile masked).
    pred2 = jax.random.normal(k3, (100, 160), dtype=jnp.float32)
    tgt2 = jax.random.normal(k4, (100, 160), dtype=jnp.float32)
    out2 = jax.block_until_ready(mse_with_trig_constraint(pred2, tgt2, 0.5, tm=32))
    ref2 = jax.block_until_ready(_reference(pred2, tgt2, 0.5))
    assert jnp.allclose(out2, ref2, rtol=1e-4, atol=1e-5), (out2, ref2)

    # Case 3: odd tile count -> phantom tile on core 1 plus ragged real tile
    # (N=80, D=96, tm=32 -> 3 real tiles, grid covers 4).
    pred3 = jax.random.normal(k5, (80, 96), dtype=jnp.float32)
    tgt3 = jax.random.normal(k6, (80, 96), dtype=jnp.float32)
    out3 = jax.block_until_ready(mse_with_trig_constraint(pred3, tgt3, 2.0, tm=32))
    ref3 = jax.block_until_ready(_reference(pred3, tgt3, 2.0))
    assert jnp.allclose(out3, ref3, rtol=1e-4, atol=1e-5), (out3, ref3)

    print("KERNEL_OK")
</pallas_src>

<mosaic_0001>
module attributes {stable_mosaic.version = 11 : i64} {
  func.func @_mse_trig_kernel(%arg0: i32, %arg1: i32, %arg2: memref<8x32xf32, #tpu.memory_space<vmem>>, %arg3: memref<8x32xf32, #tpu.memory_space<vmem>>, %arg4: memref<1x2x128xf32, #tpu.memory_space<vmem>>, %arg5: memref<2xf32, #tpu.memory_space<smem>>) attributes {dimension_semantics = [#tpu.dimension_semantics<parallel>, #tpu.dimension_semantics<arbitrary>], iteration_bounds = array<i64: 1, 1>, scalar_prefetch = 0 : i64, scratch_operands = 1 : i64, tpu.core_type = #tpu.core_type<tc>, window_params = [{transform_indices = @transform_0, window_bounds = array<i64: 8, 32>}, {transform_indices = @transform_1, window_bounds = array<i64: 8, 32>}, {transform_indices = @transform_2, window_bounds = array<i64: 1, 2, 128>}]} {
    %c0_i32 = arith.constant 0 : i32
    %0 = arith.cmpi eq, %arg1, %c0_i32 : i32
    %1 = arith.extui %0 : i1 to i32
    %c0_i32_0 = arith.constant 0 : i32
    %2 = arith.cmpi ne, %1, %c0_i32_0 : i32
    scf.if %2 {
      %cst_11 = arith.constant 0.000000e+00 : f32
      %c0_12 = arith.constant 0 : index
      %33 = memref.load %arg5[%c0_12] : memref<2xf32, #tpu.memory_space<smem>>
      memref.store %cst_11, %arg5[%c0_12] : memref<2xf32, #tpu.memory_space<smem>>
      %cst_13 = arith.constant 0.000000e+00 : f32
      %c1_14 = arith.constant 1 : index
      %34 = memref.load %arg5[%c1_14] : memref<2xf32, #tpu.memory_space<smem>>
      memref.store %cst_13, %arg5[%c1_14] : memref<2xf32, #tpu.memory_space<smem>>
    } else {
    }
    %c0 = arith.constant 0 : index
    %c0_1 = arith.constant 0 : index
    %3 = vector.load %arg2[%c0, %c0_1] : memref<8x32xf32, #tpu.memory_space<vmem>>, vector<8x32xf32>
    %c0_2 = arith.constant 0 : index
    %c0_3 = arith.constant 0 : index
    %4 = vector.load %arg3[%c0_2, %c0_3] : memref<8x32xf32, #tpu.memory_space<vmem>>, vector<8x32xf32>
    %5 = arith.subf %3, %4 : vector<8x32xf32>
    %6 = vector.extract_strided_slice %3 {offsets = [0, 30], sizes = [8, 1], strides = [1, 1]} : vector<8x32xf32> to vector<8x1xf32>
    %7 = vector.extract_strided_slice %3 {offsets = [0, 31], sizes = [8, 1], strides = [1, 1]} : vector<8x32xf32> to vector<8x1xf32>
    %8 = arith.mulf %6, %6 : vector<8x1xf32>
    %9 = arith.mulf %7, %7 : vector<8x1xf32>
    %10 = arith.addf %8, %9 : vector<8x1xf32>
    %11 = math.sqrt %10 : vector<8x1xf32>
    %cst = arith.constant 1.000000e+00 : f32
    %12 = vector.broadcast %cst : f32 to vector<8x1xf32>
    %13 = arith.subf %12, %11 : vector<8x1xf32>
    %14 = math.absf %13 : vector<8x1xf32>
    %c0_4 = arith.constant 0 : index
    %15 = memref.load %arg5[%c0_4] : memref<2xf32, #tpu.memory_space<smem>>
    %16 = arith.mulf %5, %5 : vector<8x32xf32>
    %17 = vector.shape_cast %16 : vector<8x32xf32> to vector<1x8x32xf32>
    %cst_5 = arith.constant dense<0.000000e+00> : vector<1xf32>
    %18 = vector.multi_reduction <add>, %17, %cst_5 [1, 2] : vector<1x8x32xf32> to vector<1xf32>
    %19 = vector.shape_cast %18 : vector<1xf32> to vector<1x1x1xf32>
    %20 = vector.extract %19[0, 0, 0] : f32 from vector<1x1x1xf32>
    %21 = arith.addf %15, %20 : f32
    %c0_6 = arith.constant 0 : index
    %22 = memref.load %arg5[%c0_6] : memref<2xf32, #tpu.memory_space<smem>>
    memref.store %21, %arg5[%c0_6] : memref<2xf32, #tpu.memory_space<smem>>
    %c1 = arith.constant 1 : index
    %23 = memref.load %arg5[%c1] : memref<2xf32, #tpu.memory_space<smem>>
    %24 = vector.shape_cast %14 : vector<8x1xf32> to vector<1x8x1xf32>
    %cst_7 = arith.constant dense<0.000000e+00> : vector<1xf32>
    %25 = vector.multi_reduction <add>, %24, %cst_7 [1, 2] : vector<1x8x1xf32> to vector<1xf32>
    %26 = vector.shape_cast %25 : vector<1xf32> to vector<1x1x1xf32>
    %27 = vector.extract %26[0, 0, 0] : f32 from vector<1x1x1xf32>
    %28 = arith.addf %23, %27 : f32
    %c1_8 = arith.constant 1 : index
    %29 = memref.load %arg5[%c1_8] : memref<2xf32, #tpu.memory_space<smem>>
    memref.store %28, %arg5[%c1_8] : memref<2xf32, #tpu.memory_space<smem>>
    %c0_i32_9 = arith.constant 0 : i32
    %30 = arith.cmpi eq, %arg1, %c0_i32_9 : i32
    %31 = arith.extui %30 : i1 to i32
    %c0_i32_10 = arith.constant 0 : i32
    %32 = arith.cmpi ne, %31, %c0_i32_10 : i32
    scf.if %32 {
      %c0_11 = arith.constant 0 : index
      %33 = memref.load %arg5[%c0_11] : memref<2xf32, #tpu.memory_space<smem>>
      %34 = vector.broadcast %33 : f32 to vector<1x1x128xf32>
      %c1_12 = arith.constant 1 : index
      %35 = memref.load %arg5[%c1_12] : memref<2xf32, #tpu.memory_space<smem>>
      %36 = vector.broadcast %35 : f32 to vector<1x1x128xf32>
      %37 = tpu.concatenate %34, %36 in 1 : vector<1x1x128xf32>, vector<1x1x128xf32> -> vector<1x2x128xf32>
      %c0_13 = arith.constant 0 : index
      %c0_14 = arith.constant 0 : index
      %c0_15 = arith.constant 0 : index
      %38 = vector.load %arg4[%c0_13, %c0_14, %c0_15] : memref<1x2x128xf32, #tpu.memory_space<vmem>>, vector<1x2x128xf32>
      tpu.vector_store %arg4[%c0_13, %c0_14, %c0_15], %37 {strides = array<i32>} : memref<1x2x128xf32, #tpu.memory_space<vmem>>, vector<1x2x128xf32>,
    } else {
    }
    return
  }
  func.func @transform_0(%arg0: i32, %arg1: i32) -> (i32, i32) {
    %c1_i32 = arith.constant 1 : i32
    %0 = arith.muli %arg0, %c1_i32 : i32
    %1 = arith.addi %0, %arg1 : i32
    %c0_i32 = arith.constant 0 : i32
    %2 = arith.minsi %1, %c0_i32 : i32
    %c0_i32_0 = arith.constant 0 : i32
    %c0_i32_1 = arith.constant 0 : i32
    return %2, %c0_i32_0 : i32, i32
  }
  func.func @transform_1(%arg0: i32, %arg1: i32) -> (i32, i32) {
    %c1_i32 = arith.constant 1 : i32
    %0 = arith.muli %arg0, %c1_i32 : i32
    %1 = arith.addi %0, %arg1 : i32
    %c0_i32 = arith.constant 0 : i32
    %2 = arith.minsi %1, %c0_i32 : i32
    %c0_i32_0 = arith.constant 0 : i32
    %c0_i32_1 = arith.constant 0 : i32
    return %2, %c0_i32_0 : i32, i32
  }
  func.func @transform_2(%arg0: i32, %arg1: i32) -> (i32, i32, i32) {
    %c0_i32 = arith.constant 0 : i32
    %c0_i32_0 = arith.constant 0 : i32
    %c0_i32_1 = arith.constant 0 : i32
    return %arg0, %c0_i32, %c0_i32_0 : i32, i32, i32
  }
}

</mosaic_0001>

<bundles_post_ra>
// kernel: tpu_custom_call.1
= control target key start
LH: loop header
LB: loop body
LE: loop exit
PB: predicated region body
PF: predicated region fallthrough
CT: control target
= control target key end

     0   :  { %7 = vsyncpa [#allocation4], 0  ;;  %s284_s0 = inlined_call_operand.hbm [shape: f32[8,32], index: 0, kind: input, shape index: {}]   ;;  %s285_s1 = inlined_call_operand.hbm [shape: f32[8,32], index: 1, kind: input, shape index: {}]   ;;  %s286_s2 = inlined_call_operand.hbm [shape: f32[1,2,128], index: 2, kind: output, shape index: {}]  }
   0x1   :  { %8 = vsyncpa [#allocation7], 0 }
   0x2   :  { %9 = vsyncpa [#allocation5], 0  ;;  %s228_s9 = smov [#allocation3]   ;;  %s229_s11 = smov [#allocation6]  }
   0x3   :  { %s21_s10 = sshll.u32 %s228_s9, 4  ;;  %s36_s12 = sshll.u32 %s229_s11, 4  ;;  %s22_s10 = int_to_ptr.vmem [resolvable:$true] %s21_s10  ;;  %s37_s12 = int_to_ptr.vmem [resolvable:$true] %s36_s12 }
   0x4   :  { %s156_s15 = scalar_lea.hbm %s284_s0, 128 }
   0x5   :  { %p157_p0 = scmp.ne.s32.totalorder %s284_s0, %s156_s15  ;;  %p160_p1 = scmp.lt.u32.totalorder %s156_s15, %s284_s0 }
   0x7   :  { %p162_p2 = pnand %p160_p1, %p157_p0 }
   0x9   :  { %165 = shalt.err (!%p162_p2)
}
   0xa   :  { %s166_s20 = scalar_lea.vmem %s22_s10, 128  ;;  %p171_p4 = scmp.lt.s32.totalorder %s22_s10, %s22_s10 }
   0xb   :  { %p167_p3 = scmp.ne.s32.totalorder %s22_s10, %s166_s20  ;;  %p172_p5 = scmp.lt.s32.totalorder %s166_s20, %s166_s20 }
   0xd   :  { %p173_p6 = por %p172_p5, %p171_p4 }
   0xf   :  { %p174_p7 = pnand %p173_p6, %p167_p3 }
  0x11   :  { %177 = shalt.err (!%p174_p7)
}
  0x12   :  { %24 = dma.hbm_to_vmem [thread:$0]  %s284_s0, 128, %s22_s10, [#allocation4]  }
  0x13   :  { %s178_s25 = scalar_lea.hbm %s285_s1, 128 }
  0x14   :  { %p179_p8 = scmp.ne.s32.totalorder %s285_s1, %s178_s25  ;;  %p182_p9 = scmp.lt.u32.totalorder %s178_s25, %s285_s1 }
  0x16   :  { %p184_p10 = pnand %p182_p9, %p179_p8 }
  0x18   :  { %187 = shalt.err (!%p184_p10)
}
  0x19   :  { %s188_s30 = scalar_lea.vmem %s37_s12, 128  ;;  %p193_p12 = scmp.lt.s32.totalorder %s37_s12, %s37_s12 }
  0x1a   :  { %p189_p11 = scmp.ne.s32.totalorder %s37_s12, %s188_s30  ;;  %p194_p13 = scmp.lt.s32.totalorder %s188_s30, %s188_s30 }
  0x1c   :  { %p195_p0 = por %p194_p13, %p193_p12 }
  0x1e   :  { %p196_p1 = pnand %p195_p0, %p189_p11 }
  0x20   :  { %199 = shalt.err (!%p196_p1)
}
  0x21   :  { %39 = dma.hbm_to_vmem [thread:$0]  %s285_s1, 128, %s37_s12, [#allocation7]  }
  0x22   :  { %222 = dma.done.wait [#allocation4], 128  }
  0x23   :  { %223 = vsyncadd [#allocation4], 4294967168 }
  0x24   :  { %224 = dma.done.wait [#allocation7], 128  }
  0x25   :  { %225 = vsyncadd [#allocation7], 4294967168  ;;  %v60_v0 = vld [vmem:[#allocation3] sm:$0xff]  ;;  %s230_s4 = smov 127   ;;  %v61_v2 = vld [vmem:[#allocation6] sm:$0xff]  ;;  %vm80_vm0 = vcmask 261120  }
  0x26   :  { %v63_v1 = vmul.f32 %v60_v0, %v60_v0  ;;  %v62_v3 = vsub.f32 %v60_v0, %v61_v2  ;;  %s231_s1 = smov 98   ;;  %vm99_vm3 = vcmask 7168   ;;  %s232_s6 = smov [#allocation8]   ;;  %vm120_vm4 = vcmask 1040384  }
  0x27   :  { %s129_s7 = sshll.u32 %s232_s6, 4  ;;  %s130_s7 = int_to_ptr.vmem [resolvable:$true] %s129_s7 }
  0x28   :  { %65 = vrot.lane.b32.xlu0 %v63_v1, %s230_s4  ;;  %v79_v4 = vmul.f32 %v62_v3, %v62_v3  ;;  %s200_s9 = scalar_lea.vmem %s130_s7, 32  ;;  %p205_p3 = scmp.lt.s32.totalorder %s130_s7, %s130_s7 }
  0x29   :  { %p201_p2 = scmp.ne.s32.totalorder %s130_s7, %s200_s9  ;;  %p206_p4 = scmp.lt.s32.totalorder %s200_s9, %s200_s9 }
  0x2a   :  { %v81_v5 = vsel %vm80_vm0, %v79_v4, 0.0 }
  0x2b   :  { %82 = vadd.xlane.f32.xlu1 %v81_v5  ;;  %p207_p5 = por %p206_p4, %p205_p3 }
  0x2d   :  { %p208_p6 = pnand %p207_p5, %p201_p2 }
  0x9a   :  { %v66_v6 = vpop.permute.xlu0 %65 }
  0x9b   :  { %v68_v7 = vadd.f32 %v66_v6, %v63_v1 }
  0x9d   :  { %154 = vrsqrt.f32 %v68_v7  ;;  %vm71_vm1 = vcmp.eq.f32.partialorder %v68_v7, inf  ;;  %v74_v10 = vand.u32 2147483648, %v68_v7  ;;  %vm73_vm2 = vcmp.eq.f32.partialorder %v68_v7, 0.0 }
  0xa7   :  { %v155_v8 = vpop.eup %154 }
  0xa8   :  { %v70_v9 = vmul.f32 %v155_v8, %v68_v7 }
  0xaa   :  { %v72_v11 = vsel %vm71_vm1, %v68_v7, %v70_v9 }
  0xab   :  { %v75_v12 = vsel %vm73_vm2, %v74_v10, %v72_v11 }
  0xac   :  { %v76_v13 = vsub.f32 1.0, %v75_v12 }
  0xae   :  { %v77_v14 = vand.u32 2147483647, %v76_v13 }
  0xb0   :  { %96 = vrot.lane.b32.xlu0 %v77_v14, %s231_s1 }
  0xb8   :  { %v83_v15 = vpop.xlane.xlu1 %82 }
  0xb9   :  { %v84_v17 = vrot.slane %v83_v15, 4 }
  0xbb   :  { %v85_v19 = vadd.f32 %v84_v17, %v83_v15 }
  0xbd   :  { %v86_v20 = vrot.slane %v85_v19, 2 }
  0xbf   :  { %v87_v21 = vadd.f32 %v86_v20, %v85_v19 }
  0xc1   :  { %v88_v22 = vrot.slane %v87_v21, 1 }
  0xc3   :  { %v89_v23 = vadd.f32 %v88_v22, %v87_v21 }
  0xc5   :  { %145 = vpush %v89_v23 }
  0xf6   :  { %s146_s5 = spop %145 }
  0xf7   :  { %v117_v31 = vstv %s146_s5 }
 0x122   :  { %v97_v16 = vpop.permute.xlu0 %96 }
 0x123   :  { %v100_v18 = vsel %vm99_vm3, %v97_v16, 0.0 }
 0x124   :  { %101 = vadd.xlane.f32.xlu1 %v100_v18 }
 0x1b1   :  { %v102_v24 = vpop.xlane.xlu1 %101 }
 0x1b2   :  { %v103_v25 = vrot.slane %v102_v24, 4 }
 0x1b4   :  { %v104_v26 = vadd.f32 %v103_v25, %v102_v24 }
 0x1b6   :  { %v105_v27 = vrot.slane %v104_v26, 2 }
 0x1b8   :  { %v106_v28 = vadd.f32 %v105_v27, %v104_v26 }
 0x1ba   :  { %v107_v29 = vrot.slane %v106_v28, 1 }
 0x1bc   :  { %v108_v30 = vadd.f32 %v107_v29, %v106_v28 }
 0x1be   :  { %147 = vpush %v108_v30 }
 0x1ef   :  { %s148_s8 = spop %147 }
 0x1f0   :  { %v119_v32 = vstv %s148_s8 }
 0x1f1   :  { %v121_v33 = vsel %vm120_vm4, %v117_v31, %v119_v32 }
 0x1f2   :  { %122 = vst [vmem:[#allocation8] sm:$0x3] %v121_v33 }
 0x1f3   :  { %211 = shalt.err (!%p208_p6)
}
 0x1f4   :  { %s212_s12 = scalar_lea.hbm %s286_s2, 32 }
 0x1f5   :  { %p213_p7 = scmp.ne.s32.totalorder %s286_s2, %s212_s12  ;;  %p216_p8 = scmp.lt.u32.totalorder %s212_s12, %s286_s2 }
 0x1f7   :  { %p218_p9 = pnand %p216_p8, %p213_p7 }
 0x1f9   :  { %221 = shalt.err (!%p218_p9)
}
 0x1fa   :  { %132 = dma.vmem_to_hbm [thread:$0]  %s130_s7, 32, %s286_s2, [#allocation5]  }
 0x1fb   :  { %226 = dma.done.wait [#allocation5], 32  }
 0x1fc   :  { %227 = vsyncadd [#allocation5], 4294967264 }
 0x1fd   :  { %136 = vsyncpa [#allocation4], 1 }
 0x1fe   :  { %137 = vsyncpa [#allocation7], 1 }
 0x1ff   :  { %138 = vsyncpa [#allocation5], 1 }

</bundles_post_ra>
